<compile_context>
chip_gen: v7x
topology: tpu7x:2x2x1
jax: 0.10.0
libtpu: 0.0.40
codegen_flags: <defaults>
</compile_context>

<pallas_src>
import functools
import math

import jax
import jax.numpy as jnp
from jax.experimental import pallas as pl
from jax.experimental.pallas import tpu as pltpu

_LN10 = math.log(10.0)

_LANES = 1024        # lane-dense width for the tiled (large-P) path
_BLOCK_ROWS = 512    # 512x1024 f32 tile = 2 MiB; 2x double-buffered in+out = 8 MiB
_SMALL_P_MAX = 1024  # at/below this, a single full-array block is launched


def _damping_kernel(const_ref, out_ref, *, bias: float, scale: float):
    # lambda = exp(bias + scale * tanh(0.5 * c))  — 2 EUP pushes + 1 VALU FMA.
    c = const_ref[...]
    t = jnp.tanh(jnp.float32(0.5) * c)
    out_ref[...] = jnp.exp(jnp.float32(bias) + jnp.float32(scale) * t)


def _fold_constants(log_range):
    # 10**(min + s*(max-min)) with s = 0.5*(1 + tanh(c/2))
    #   = exp( ln10*(min + 0.5*(max-min)) + ln10*0.5*(max-min) * tanh(c/2) )
    log_min, log_max = float(log_range[0]), float(log_range[1])
    bias = _LN10 * (log_min + 0.5 * (log_max - log_min))
    scale = _LN10 * 0.5 * (log_max - log_min)
    return bias, scale


def damping_net_lambda_jnp(const: jax.Array, log_range=(-6.0, 5.0)) -> jax.Array:
    """Plain-jnp DampingNet.forward(); preferred when XLA can fuse it into a consumer."""
    min_, max_ = float(log_range[0]), float(log_range[1])
    return 10.0 ** (min_ + jax.nn.sigmoid(const) * (max_ - min_))


def damping_net_forward(const: jax.Array, log_range=(-6.0, 5.0)) -> jax.Array:
    """Pallas implementation of DampingNet.forward().

    Args:
      const: (num_params,) f32 learnable parameter vector.
      log_range: static (min_, max_) tuple from conf.log_range.
    Returns:
      lambda_: (num_params,) f32 damping values.
    """
    bias, scale = _fold_constants(log_range)
    kernel = functools.partial(_damping_kernel, bias=bias, scale=scale)

    p = const.shape[0]
    if const.dtype != jnp.float32:
        const = const.astype(jnp.float32)  # no-op for the stated f32 param

    if p <= _SMALL_P_MAX:
        # ---- small-P path: one grid point, full-array block, single core ----
        const2d = const.reshape(1, p)  # metadata-only reshape
        out2d = pl.pallas_call(
            kernel,
            out_shape=jax.ShapeDtypeStruct((1, p), jnp.float32),
            in_specs=[pl.BlockSpec(memory_space=pltpu.VMEM)],
            out_specs=pl.BlockSpec(memory_space=pltpu.VMEM),
            cost_estimate=pl.CostEstimate(
                flops=3 * p, transcendentals=2 * p, bytes_accessed=8 * p),
        )(const2d)
        return out2d.reshape(p)

    # ---- large-P path: lane-dense slab + 1-D tiled, pipelined grid ----
    rows = pl.cdiv(p, _LANES)
    p_pad = rows * _LANES
    x = const if p_pad == p else jnp.pad(const, (0, p_pad - p))
    x2d = x.reshape(rows, _LANES)

    # Block rows: full extent if small, else 512 (divisible by 8 -> valid tile).
    block_rows = rows if rows < _BLOCK_ROWS else _BLOCK_ROWS
    grid = (pl.cdiv(rows, block_rows),)

    out2d = pl.pallas_call(
        kernel,
        out_shape=jax.ShapeDtypeStruct((rows, _LANES), jnp.float32),
        grid=grid,
        in_specs=[pl.BlockSpec((block_rows, _LANES), lambda i: (i, 0))],
        out_specs=pl.BlockSpec((block_rows, _LANES), lambda i: (i, 0)),
        compiler_params=pltpu.CompilerParams(
            dimension_semantics=("parallel",)),  # shards across v7x's 2 TCs
        cost_estimate=pl.CostEstimate(
            flops=3 * p_pad, transcendentals=2 * p_pad, bytes_accessed=8 * p_pad),
    )(x2d)
    return out2d.reshape(p_pad)[:p]


if __name__ == "__main__":
    log_range = (-6.0, 5.0)
    min_, max_ = log_range
    key = jax.random.PRNGKey(0)

    # --- module-default size (num_params=6): exercises the small-P path ---
    num_params = 6
    const = 0.1 * jax.random.normal(key, (num_params,), dtype=jnp.float32)
    lam = jax.block_until_ready(damping_net_forward(const, log_range))
    ref = 10.0 ** (min_ + jax.nn.sigmoid(const) * (max_ - min_))
    assert lam.shape == (num_params,)
    assert jnp.allclose(lam, ref, rtol=1e-4, atol=0.0), (lam, ref)

    # --- modest larger size: exercises the lane-dense tiled path ---
    p_big = 4096
    const_big = 0.1 * jax.random.normal(
        jax.random.PRNGKey(1), (p_big,), dtype=jnp.float32)
    lam_big = jax.block_until_ready(damping_net_forward(const_big, log_range))
    ref_big = 10.0 ** (min_ + jax.nn.sigmoid(const_big) * (max_ - min_))
    assert lam_big.shape == (p_big,)
    assert jnp.allclose(lam_big, ref_big, rtol=1e-4, atol=0.0)

    print("KERNEL_OK")
</pallas_src>

<mosaic_0001>
module attributes {stable_mosaic.version = 11 : i64} {
  func.func @_damping_kernel(%arg0: memref<1x6xf32, #tpu.memory_space<vmem>>, %arg1: memref<1x6xf32, #tpu.memory_space<vmem>>) attributes {dimension_semantics = [], scalar_prefetch = 0 : i64, scratch_operands = 0 : i64, tpu.core_type = #tpu.core_type<tc>} {
    %c0 = arith.constant 0 : index
    %c0_0 = arith.constant 0 : index
    %0 = vector.load %arg0[%c0, %c0_0] : memref<1x6xf32, #tpu.memory_space<vmem>>, vector<1x6xf32>
    %cst = arith.constant 5.000000e-01 : f32
    %1 = vector.broadcast %cst : f32 to vector<1x6xf32>
    %2 = arith.mulf %1, %0 : vector<1x6xf32>
    %3 = math.tanh %2 : vector<1x6xf32>
    %cst_1 = arith.constant 12.6642179 : f32
    %4 = vector.broadcast %cst_1 : f32 to vector<1x6xf32>
    %5 = arith.mulf %4, %3 : vector<1x6xf32>
    %cst_2 = arith.constant -1.15129256 : f32
    %6 = vector.broadcast %cst_2 : f32 to vector<1x6xf32>
    %7 = arith.addf %6, %5 : vector<1x6xf32>
    %8 = math.exp %7 : vector<1x6xf32>
    %c0_3 = arith.constant 0 : index
    %c0_4 = arith.constant 0 : index
    %9 = vector.load %arg1[%c0_3, %c0_4] : memref<1x6xf32, #tpu.memory_space<vmem>>, vector<1x6xf32>
    tpu.vector_store %arg1[%c0_3, %c0_4], %8 {strides = array<i32>} : memref<1x6xf32, #tpu.memory_space<vmem>>, vector<1x6xf32>,
    return
  }
}

</mosaic_0001>

<bundles_post_ra>
// kernel: tpu_custom_call.1
= control target key start
LH: loop header
LB: loop body
LE: loop exit
PB: predicated region body
PF: predicated region fallthrough
CT: control target
= control target key end

     0   :  { %6 = vsyncpa [#allocation3], 0  ;;  %s135_s0 = inlined_call_operand.hbm [shape: f32[1,6], index: 0, kind: input, shape index: {}]   ;;  %s136_s1 = inlined_call_operand.hbm [shape: f32[1,6], index: 1, kind: output, shape index: {}]  }
   0x1   :  { %7 = vsyncpa [#allocation4], 0  ;;  %s99_s6 = smov [#allocation2]   ;;  %s51_s10 = scalar_lea.hbm %s135_s0, 16 }
   0x2   :  { %s14_s7 = sshll.u32 %s99_s6, 4  ;;  %p52_p0 = scmp.ne.s32.totalorder %s135_s0, %s51_s10  ;;  %s15_s7 = int_to_ptr.vmem [resolvable:$true] %s14_s7 }
   0x3   :  { %p55_p1 = scmp.lt.u32.totalorder %s51_s10, %s135_s0 }
   0x5   :  { %p57_p2 = pnand %p55_p1, %p52_p0 }
   0x7   :  { %60 = shalt.err (!%p57_p2)
}
   0x8   :  { %s61_s15 = scalar_lea.vmem %s15_s7, 16  ;;  %s65_s16 = scalar_lea.vmem %s15_s7, 32 }
   0x9   :  { %p62_p3 = scmp.ne.s32.totalorder %s15_s7, %s61_s15  ;;  %p66_p4 = scmp.lt.s32.totalorder %s15_s7, %s15_s7 }
   0xa   :  { %p67_p5 = scmp.lt.s32.totalorder %s65_s16, %s61_s15 }
   0xc   :  { %p68_p6 = por %p67_p5, %p66_p4 }
   0xe   :  { %p69_p7 = pnand %p68_p6, %p62_p3 }
  0x10   :  { %72 = shalt.err (!%p69_p7)
}
  0x11   :  { %17 = dma.hbm_to_vmem [thread:$0]  %s135_s0, 16, %s15_s7, [#allocation3]  }
  0x12   :  { %95 = dma.done.wait [#allocation3], 16  }
  0x13   :  { %96 = vsyncadd [#allocation3], 4294967280  ;;  %v21_v0 = vld [vmem:[#allocation2] sm:$0x1]  ;;  %s100_s19 = smov [#allocation5]   ;;  %vm28_vm0 = vcmask 40960  }
  0x14   :  { %v22_v1 = vmul.f32 0.5, %v21_v0  ;;  %s36_s20 = sshll.u32 %s100_s19, 4  ;;  %s37_s20 = int_to_ptr.vmem [resolvable:$true] %s36_s20 }
  0x15   :  { %s73_s21 = scalar_lea.vmem %s37_s20, 16  ;;  %s77_s22 = scalar_lea.vmem %s37_s20, 32 }
  0x16   :  { %47 = vtanh.f32 %v22_v1  ;;  %p74_p8 = scmp.ne.s32.totalorder %s37_s20, %s73_s21  ;;  %p78_p9 = scmp.lt.s32.totalorder %s37_s20, %s37_s20 }
  0x17   :  { %p79_p10 = scmp.lt.s32.totalorder %s77_s22, %s73_s21 }
  0x19   :  { %p80_p11 = por %p79_p10, %p78_p9 }
  0x1b   :  { %p81_p12 = pnand %p80_p11, %p74_p8 }
  0x20   :  { %v48_v2 = vpop.eup %47 }
  0x21   :  { %v24_v3 = vmul.f32 12.664218, %v48_v2 }
  0x23   :  { %v25_v4 = vadd.f32 -1.1512926, %v24_v3 }
  0x25   :  { %v26_v5 = vmul.f32 1.442695, %v25_v4 }
  0x27   :  { %49 = vpow2.f32 %v26_v5 }
  0x31   :  { %v50_v6 = vpop.eup %49 }
  0x32   :  { %29 = vst.msk [vmem:[#allocation5] sm:$0x1] %vm28_vm0, %v50_v6 }
  0x33   :  { %84 = shalt.err (!%p81_p12)
}
  0x34   :  { %s85_s24 = scalar_lea.hbm %s136_s1, 16 }
  0x35   :  { %p86_p13 = scmp.ne.s32.totalorder %s136_s1, %s85_s24  ;;  %p89_p0 = scmp.lt.u32.totalorder %s85_s24, %s136_s1 }
  0x37   :  { %p91_p1 = pnand %p89_p0, %p86_p13 }
  0x39   :  { %94 = shalt.err (!%p91_p1)
}
  0x3a   :  { %39 = dma.vmem_to_hbm [thread:$0]  %s37_s20, 16, %s136_s1, [#allocation4]  }
  0x3b   :  { %97 = dma.done.wait [#allocation4], 16  }
  0x3c   :  { %98 = vsyncadd [#allocation4], 4294967280 }
  0x3d   :  { %43 = vsyncpa [#allocation3], 1 }
  0x3e   :  { %44 = vsyncpa [#allocation4], 1 }

</bundles_post_ra>
